<compile_context>
chip_gen: v7x
topology: tpu7x:2x2x1
jax: 0.10.0
libtpu: 0.0.40
codegen_flags: <defaults>
</compile_context>

<pallas_src>
import functools

import jax
import jax.numpy as jnp
from jax import lax
from jax.experimental import pallas as pl
from jax.experimental.pallas import tpu as pltpu


def _shift_conv_kernel(x_ref, w_ref, b_ref, o_ref, prev_ref, *, fold):
    # x_ref:    (C, tile_hw)   current frame tile (channels on sublanes, HW on lanes)
    # w_ref:    (C, C)         1x1-conv weight (C_out, C_in), resident across the grid
    # b_ref:    (C, 1)         bias
    # prev_ref: (C, tile_hw)   VMEM scratch carrying frame t-1's tile for this HW tile
    t = pl.program_id(1)
    cur = x_ref[...]

    # Frame 0 shifts from itself -> identity on the first `fold` channels (matches PyTorch).
    @pl.when(t == 0)
    def _():
        prev_ref[...] = cur

    prev = prev_ref[...]
    ch = lax.broadcasted_iota(jnp.int32, cur.shape, 0)          # channel index (sublane axis)
    shifted = jnp.where(ch < fold, prev, cur).astype(cur.dtype)

    # Carry this frame for the next frame of the same HW tile (N is the innermost grid axis).
    prev_ref[...] = cur

    # 1x1 conv == per-pixel matmul on the MXU, f32 accumulation.
    acc = jnp.dot(w_ref[...], shifted, preferred_element_type=jnp.float32)
    o_ref[...] = (acc + b_ref[...].astype(jnp.float32)).astype(o_ref.dtype)


def temporal_shift_conv(x_nchw, weight, bias, fold_div=8, tile_hw=None):
    """x_nchw: (N, C, H, W); weight: (C_out, C_in) for a 1x1 conv; bias: (C_out,)."""
    N, C, H, W = x_nchw.shape
    fold = C // fold_div
    HW = H * W

    # NCHW -> (N, C, HW): pure reshape, no data movement.
    x = x_nchw.reshape(N, C, HW)
    b2d = bias.reshape(C, 1)

    # Pick the largest lane-aligned HW tile that divides HW; fall back to the full extent.
    if tile_hw is None:
        tile_hw = HW
        for cand in (2048, 1024, 512, 256, 128):
            if HW % cand == 0:
                tile_hw = cand
                break
    assert HW % tile_hw == 0, "tile_hw must divide H*W"
    n_hw = HW // tile_hw

    kernel = functools.partial(_shift_conv_kernel, fold=fold)

    out = pl.pallas_call(
        kernel,
        out_shape=jax.ShapeDtypeStruct((N, C, HW), x.dtype),
        grid_spec=pltpu.PrefetchScalarGridSpec(
            num_scalar_prefetch=0,
            grid=(n_hw, N),                    # N innermost: scratch carries frame t-1 -> t
            in_specs=[
                # current frame tile: (C, tile_hw), channels on sublanes, HW on lanes
                pl.BlockSpec((None, C, tile_hw), lambda h, t: (t, 0, h)),
                # 1x1 conv weight, resident across the grid
                pl.BlockSpec((C, C), lambda h, t: (0, 0)),
                # bias
                pl.BlockSpec((C, 1), lambda h, t: (0, 0)),
            ],
            out_specs=pl.BlockSpec((None, C, tile_hw), lambda h, t: (t, 0, h)),
            scratch_shapes=[pltpu.VMEM((C, tile_hw), x.dtype)],
        ),
        compiler_params=pltpu.CompilerParams(
            # HW tiles are independent (scratch resets at t==0)  -> parallel (v7x 2-TC);
            # N carries the previous-frame scratch                -> arbitrary.
            dimension_semantics=("parallel", "arbitrary"),
        ),
    )(x, weight, b2d)

    out_nchw = out.reshape(N, C, H, W)

    # side attribute self.shifted_features = x[:-1, :fold]  (plain slice -> JAX glue)
    shifted_features = x_nchw[:-1, :fold, :, :]
    return out_nchw, shifted_features


def _reference(x_nchw, weight, bias, fold_div=8):
    N, C, H, W = x_nchw.shape
    fold = C // fold_div
    out = jnp.zeros_like(x_nchw)
    out = out.at[0, :fold].set(x_nchw[0, :fold])
    out = out.at[1:, :fold].set(x_nchw[:-1, :fold])
    out = out.at[:, fold:].set(x_nchw[:, fold:])
    y = jnp.einsum('nchw,oc->nohw', out, weight) + bias[None, :, None, None]
    return y


if __name__ == "__main__":
    key = jax.random.PRNGKey(0)
    k_x, k_w, k_b = jax.random.split(key, 3)

    N, C, H, W = 4, 32, 16, 16        # N = temporal frames (as in the PyTorch module)
    fold_div = 8

    x = jax.random.normal(k_x, (N, C, H, W), dtype=jnp.float32)
    weight = jax.random.normal(k_w, (C, C), dtype=jnp.float32) * 0.05   # 1x1 conv (C_out, C_in)
    bias = jax.random.normal(k_b, (C,), dtype=jnp.float32) * 0.01

    # tile_hw=128 -> 2 HW tiles: exercises the tiled grid + scratch-carry path at small scale.
    out, shifted_feats = temporal_shift_conv(x, weight, bias, fold_div, tile_hw=128)
    out = jax.block_until_ready(out)
    shifted_feats = jax.block_until_ready(shifted_feats)

    ref = _reference(x, weight, bias, fold_div)
    assert out.shape == (N, C, H, W)
    assert shifted_feats.shape == (N - 1, C // fold_div, H, W)
    assert jnp.allclose(out, ref, atol=1e-4, rtol=1e-4)

    print("KERNEL_OK")
</pallas_src>

<mosaic_0001>
module attributes {stable_mosaic.version = 11 : i64} {
  func.func @_shift_conv_kernel(%arg0: i32, %arg1: i32, %arg2: memref<1x32x128xf32, #tpu.memory_space<vmem>>, %arg3: memref<32x32xf32, #tpu.memory_space<vmem>>, %arg4: memref<32x1xf32, #tpu.memory_space<vmem>>, %arg5: memref<1x32x128xf32, #tpu.memory_space<vmem>>, %arg6: memref<32x128xf32, #tpu.memory_space<vmem>>) attributes {dimension_semantics = [#tpu.dimension_semantics<parallel>, #tpu.dimension_semantics<arbitrary>], iteration_bounds = array<i64: 2, 4>, scalar_prefetch = 0 : i64, scratch_operands = 1 : i64, tpu.core_type = #tpu.core_type<tc>, window_params = [{transform_indices = @transform_0, window_bounds = array<i64: 1, 32, 128>}, {pipeline_mode = #tpu.pipeline_mode<synchronous>, transform_indices = @transform_1, window_bounds = array<i64: 32, 32>}, {pipeline_mode = #tpu.pipeline_mode<synchronous>, transform_indices = @transform_2, window_bounds = array<i64: 32, 1>}, {transform_indices = @transform_3, window_bounds = array<i64: 1, 32, 128>}]} {
    %c0 = arith.constant 0 : index
    %c0_0 = arith.constant 0 : index
    %c0_1 = arith.constant 0 : index
    %0 = vector.load %arg2[%c0, %c0_0, %c0_1] : memref<1x32x128xf32, #tpu.memory_space<vmem>>, vector<1x32x128xf32>
    %1 = vector.shape_cast %0 : vector<1x32x128xf32> to vector<32x128xf32>
    %c0_i32 = arith.constant 0 : i32
    %2 = arith.cmpi eq, %arg1, %c0_i32 : i32
    %3 = arith.extui %2 : i1 to i32
    %c0_i32_2 = arith.constant 0 : i32
    %4 = arith.cmpi ne, %3, %c0_i32_2 : i32
    scf.if %4 {
      %c0_14 = arith.constant 0 : index
      %c0_15 = arith.constant 0 : index
      %19 = vector.load %arg6[%c0_14, %c0_15] : memref<32x128xf32, #tpu.memory_space<vmem>>, vector<32x128xf32>
      tpu.vector_store %arg6[%c0_14, %c0_15], %1 {strides = array<i32>} : memref<32x128xf32, #tpu.memory_space<vmem>>, vector<32x128xf32>,
    } else {
    }
    %c0_3 = arith.constant 0 : index
    %c0_4 = arith.constant 0 : index
    %5 = vector.load %arg6[%c0_3, %c0_4] : memref<32x128xf32, #tpu.memory_space<vmem>>, vector<32x128xf32>
    %6 = tpu.iota {dimensions = array<i32: 0>} : vector<32x128xi32>
    %c4_i32 = arith.constant 4 : i32
    %7 = vector.broadcast %c4_i32 : i32 to vector<32x128xi32>
    %8 = arith.cmpi slt, %6, %7 : vector<32x128xi32>
    %9 = arith.select %8, %5, %1 : vector<32x128xi1>, vector<32x128xf32>
    %c0_5 = arith.constant 0 : index
    %c0_6 = arith.constant 0 : index
    %10 = vector.load %arg6[%c0_5, %c0_6] : memref<32x128xf32, #tpu.memory_space<vmem>>, vector<32x128xf32>
    tpu.vector_store %arg6[%c0_5, %c0_6], %1 {strides = array<i32>} : memref<32x128xf32, #tpu.memory_space<vmem>>, vector<32x128xf32>,
    %c0_7 = arith.constant 0 : index
    %c0_8 = arith.constant 0 : index
    %11 = vector.load %arg3[%c0_7, %c0_8] : memref<32x32xf32, #tpu.memory_space<vmem>>, vector<32x32xf32>
    %cst = arith.constant dense<0.000000e+00> : vector<32x128xf32>
    %12 = tpu.matmul %11, %9, %cst {dimension_numbers = #tpu.dot_dimension_numbers<[1], [0], [0], [1], [0, 0, 1, 1], [], []>} : vector<32x32xf32>, vector<32x128xf32>, vector<32x128xf32> -> vector<32x128xf32>
    %c0_9 = arith.constant 0 : index
    %c0_10 = arith.constant 0 : index
    %13 = vector.load %arg4[%c0_9, %c0_10] : memref<32x1xf32, #tpu.memory_space<vmem>>, vector<32x1xf32>
    %14 = vector.broadcast %13 : vector<32x1xf32> to vector<32x128xf32>
    %15 = arith.addf %12, %14 : vector<32x128xf32>
    %c0_11 = arith.constant 0 : index
    %c0_12 = arith.constant 0 : index
    %c0_13 = arith.constant 0 : index
    %16 = vector.load %arg5[%c0_11, %c0_12, %c0_13] : memref<1x32x128xf32, #tpu.memory_space<vmem>>, vector<1x32x128xf32>
    %17 = vector.shape_cast %16 : vector<1x32x128xf32> to vector<32x128xf32>
    %18 = vector.shape_cast %15 : vector<32x128xf32> to vector<1x32x128xf32>
    tpu.vector_store %arg5[%c0_11, %c0_12, %c0_13], %18 {strides = array<i32>} : memref<1x32x128xf32, #tpu.memory_space<vmem>>, vector<1x32x128xf32>,
    return
  }
  func.func @transform_0(%arg0: i32, %arg1: i32) -> (i32, i32, i32) {
    %c0_i32 = arith.constant 0 : i32
    %c0_i32_0 = arith.constant 0 : i32
    return %arg1, %c0_i32, %arg0 : i32, i32, i32
  }
  func.func @transform_1(%arg0: i32, %arg1: i32) -> (i32, i32) {
    %c0_i32 = arith.constant 0 : i32
    %c0_i32_0 = arith.constant 0 : i32
    %c0_i32_1 = arith.constant 0 : i32
    return %c0_i32, %c0_i32_0 : i32, i32
  }
  func.func @transform_2(%arg0: i32, %arg1: i32) -> (i32, i32) {
    %c0_i32 = arith.constant 0 : i32
    %c0_i32_0 = arith.constant 0 : i32
    %c0_i32_1 = arith.constant 0 : i32
    return %c0_i32, %c0_i32_0 : i32, i32
  }
  func.func @transform_3(%arg0: i32, %arg1: i32) -> (i32, i32, i32) {
    %c0_i32 = arith.constant 0 : i32
    %c0_i32_0 = arith.constant 0 : i32
    return %arg1, %c0_i32, %arg0 : i32, i32, i32
  }
}

</mosaic_0001>

<bundles_post_ra>
// kernel: tpu_custom_call.1
= control target key start
LH: loop header
LB: loop body
LE: loop exit
PB: predicated region body
PF: predicated region fallthrough
CT: control target
= control target key end

     0   :  { %8 = vsyncpa [#allocation4], 0  ;;  %s1003_s0 = inlined_call_operand.hbm [shape: f32[4,32,256], index: 0, kind: input, shape index: {}]   ;;  %s1004_s1 = inlined_call_operand.vmem [shape: f32[32,32], index: 1, kind: input, shape index: {}]   ;;  %s1005_s2 = inlined_call_operand.vmem [shape: f32[32,1], index: 2, kind: input, shape index: {}]   ;;  %s1006_s3 = inlined_call_operand.hbm [shape: f32[4,32,256], index: 3, kind: output, shape index: {}]  }
   0x1   :  { %10 = vsyncpa [#allocation4 + $0x1], 0 }
   0x2   :  { %11 = vsyncpa [#allocation5], 0 }
   0x3   :  { %13 = vsyncpa [#allocation5 + $0x1], 0  ;;  %s772_s12 = smov 0   ;;  %s774_s13 = smov 0  }
   0x4   :  { %s776_s14 = smov 0   ;;  %s778_s15 = smov 0  }
   0x5   :  { %s780_s16 = smov 0   ;;  %s782_s17 = smov 0  }
   0x6   :  { %s784_s18 = smov 0   ;;  %s786_s19 = smov 0  }
   0x7 LB: > { %s472_s20 = sadd.s32 4294967295, %s741_s19   ;;  %s473_s21 = sadd.s32 4294967294, %s741_s19   ;;  %s741_s19 = sphi %s786_s19, %s19_s19   ;;  %s737_s18 = sphi %s784_s18, %s1024_s18   ;;  %s733_s17 = sphi %s782_s17, %s1023_s17   ;;  %s729_s16 = sphi %s780_s16, %s1022_s16   ;;  %s725_s15 = sphi %s778_s15, %s1021_s15   ;;  %s721_s14 = sphi %s776_s14, %s1020_s14   ;;  %s717_s13 = sphi %s774_s13, %s1019_s13   ;;  %s713_s12 = sphi %s772_s12, %s1018_s12  }
   0x8   : > { %s28_s22 = sadd.s32 1, %s733_s17  ;;  %s31_s23 = sadd.s32 1, %s737_s18 }
   0x9   : > { %p29_p0 = scmp.ge.s32.totalorder %s28_s22, 4  ;;  %s40_s24 = sadd.s32 1, %s721_s14 }
   0xa   : > { %p47_p1 = scmp.ne.s32.totalorder %s721_s14, %s717_s13  ;;  %p48_p2 = scmp.eq.s32.totalorder %s741_s19, 0 }
   0xb   : > { %s1026_s22 = smov (%p29_p0, %s28_s22), 0  ;;  %s1028_s23 = smov (!%p29_p0, %s31_s23), %s737_s18 }
   0xc   : > { %s35_s25 = ssub.s32 %s733_s17, %s1026_s22  ;;  %p825_p3 = por %p48_p2, %p47_p1 }
   0xd   : > { %p33_p4 = scmp.ge.s32.totalorder %s1028_s23, 2  ;;  %p53_p5 = scmp.ne.s32.totalorder %s717_s13, %s713_s12 }
   0xe   : > { %p54_p6 = scmp.eq.s32.totalorder %s472_s20, 0  ;;  %p121_p7 = scmp.eq.s32.totalorder %s472_s20, 7 }
   0xf   : > { %s1030_s23 = smov (%p33_p4, %s1028_s23), 0  ;;  %p127_p10 = scmp.eq.s32.totalorder %s473_s21, 7 }
  0x10   : > { %1010 = sst [smem:[#allocation9_spill]] %s1030_s23  ;;  %p833_p8 = por %p54_p6, %p53_p5 }
  0x11   : > { %p837_p9 = por %p121_p7, %p47_p1  ;;  %s36_s29 = ssub.s32 %s737_s18, %s1030_s23 }
  0x12   : > { %s37_s30 = sor.u32 %s36_s29, %s35_s25  ;;  %p843_p12 = por %p127_p10, %p53_p5 }
  0x13   : > { %s1012_s28 = scalar_select %p837_p9, 1, 0 }
  0x14   : > { %p38_p11 = scmp.eq.s32.totalorder %s37_s30, 0  ;;  %p538_p13 = scmp.lt.s32.totalorder %s741_s19, 8 }
  0x15   : > { %s1013_s4 = scalar_select %p843_p12, 1, 0 }
  0x16   : > { %s153_s5 = sand.u32 1, %s721_s14   ;;  %s477_s8 = sshll.u32 %s733_s17, 3 }
  0x17   : > { %s850_s6 = scalar_select %p38_p11, %s721_s14, %s40_s24  }
  0x18   : > { %s476_s7 = sshll.u32 %s153_s5, 5  ;;  %s162_s9 = sadd.s32 %s737_s18, %s477_s8 }
  0x19   : > { %s157_s10 = scalar_lea.vmem [#allocation3], %s476_s7  ;;  %s478_s20 = sshll.u32 %s162_s9, 7 }
  0x1a   : > { %s165_s11 = sshll.u32 %s157_s10, 4  ;;  %s859_s25 = scalar_lea.hbm %s1003_s0, %s478_s20  ;;  %s854_s11 = int_to_ptr.vmem [resolvable:$true] %s165_s11 }
  0x1b   : > { %p863_p0 = pnand %p538_p13, %p825_p3  ;;  %s867_s29 = scalar_lea.sflag [#allocation4], %s153_s5 }
  0x1c   : > { %s613_s30 = scalar_lea.hbm %s859_s25, 512  ;;  %s618_s7 = scalar_lea.hbm %s1003_s0, 4096 }
  0x1d   : > { %p614_p1 = scmp.ne.s32.totalorder %s859_s25, %s613_s30  ;;  %p615_p2 = pneg %p863_p0 }
  0x1e   : > { %p619_p3 = scmp.lt.u32.totalorder %s859_s25, %s1003_s0  ;;  %p620_p6 = scmp.lt.u32.totalorder %s618_s7, %s613_s30 }
  0x1f   : > { %p616_p4 = pnand %p615_p2, %p614_p1  ;;  %p622_p10 = scmp.lt.u32.totalorder %s613_s30, %s859_s25 }
  0x20   : > { %p621_p7 = por %p620_p6, %p619_p3 }
  0x21   : > { %p617_p5 = pneg %p616_p4 }
  0x22   : > { %p623_p11 = por %p622_p10, %p621_p7 }
  0x24   : > { %p624_p13 = pnand %p623_p11, %p617_p5 }
  0x26   : > { %627 = shalt.err (!%p624_p13)
}
  0x27   : > { %s628_s5 = scalar_lea.vmem %s854_s11, 512  ;;  %s743_s10 = smov [#allocation3]  }
  0x28   : > { %p629_p1 = scmp.ne.s32.totalorder %s854_s11, %s628_s5  ;;  %s633_s20 = sshll.u32 %s743_s10, 4  ;;  %s634_s20 = int_to_ptr.vmem [resolvable:$false] %s633_s20 }
  0x29   : > { %s635_s21 = scalar_lea.vmem %s634_s20, 1024  ;;  %p636_p9 = scmp.lt.s32.totalorder %s854_s11, %s634_s20 }
  0x2a   : > { %p631_p4 = pnand %p629_p1, %p615_p2  ;;  %p637_p3 = scmp.lt.s32.totalorder %s635_s21, %s628_s5 }
  0x2c   : > { %p632_p12 = pneg %p631_p4  ;;  %p638_p6 = por %p637_p3, %p636_p9 }
  0x2e   : > { %p639_p7 = pnand %p638_p6, %p632_p12 }
  0x30   : > { %642 = shalt.err (!%p639_p7)
}
  0x31   : > { %s744_s30 = smov 256   ;;  %s745_s23 = smov 128  }
  0x32   : > { %s746_s26 = smov 8   ;;  %p479_p2 = scmp.ge.s32.totalorder %s741_s19, 1 }
  0x33   : > { %533 = dma.hbm_to_vmem [thread:$0]  (!%p863_p0), %s859_s25, 512, %s854_s11, %s867_s29, %s744_s30, %s745_s23, %s746_s26  }
  0x34   : > { %p173_p5 = scmp.lt.s32.totalorder %s741_s19, 9 }
  0x36   : > { %p174_p10 = pnand %p479_p2, %p173_p5 }
  0x37   : > { %s898_s7 = sand.u32 (!%p174_p10), 1, %s717_s13  }
  0x38   : > { %177 = sbr.rel (%p174_p10) target bundleno = 320 (0x140), region = 32  ;;  %s480_s8 = sshll.u32 (!%p174_p10), %s898_s7, 5 }
  0x39   : > { %s180_s9 = scalar_lea.sflag (!%p174_p10), [#allocation4], %s898_s7  ;;  %s183_s5 = scalar_lea.vmem (!%p174_p10), [#allocation3], %s480_s8 }
  0x3f   : > { %704 = dma.done.wait (%p833_p8), %s180_s9, 512  }
  0x40   : > { %706 = vsyncadd (%p833_p8), %s180_s9, 4294966784  ;;  %v206_v0 = vld [vmem:[%s183_s5] sm:$0xff]  ;;  %v207_v1 = vld [vmem:[%s183_s5 + $0x8] sm:$0xff]  ;;  %s906_s11 = scalar_lea.vmem [#allocation6], %s480_s8  ;;  %p482_p9 = scmp.ne.s32.totalorder %s725_s15, 0 }
  0x41   : > { %v208_v2 = vld [vmem:[%s183_s5 + $0x10] sm:$0xff]  ;;  %v209_v3 = vld [vmem:[%s183_s5 + $0x18] sm:$0xff]  ;;  %214 = vst [vmem:[#allocation2] sm:$0xff] (!%p482_p9), %v206_v0 }
  0x42   : > { %213 = sbr.rel (%p482_p9) target bundleno = 73 (0x49), region = 40 }
  0x49 PF: > { %v218_v4 = vld [vmem:[#allocation2] sm:$0xff]  ;;  %v222_v5 = vlaneseq  ;;  %vm267_vm0 = vcmask 261120   ;;  %v241_v7 = vld [vmem:[%s1004_s1 + $0x10] sm:$0xff]  ;;  %v747_v10 = vmov 0   ;;  %v246_v12 = vld [vmem:[%s1005_s2 + $0x18] sm:$0xff]  ;;  %v518_v16 = vpack.c.bf16 %v209_v3, %v208_v2  ;;  %s488_s29 = sshll.u32 %s725_s15, 3 }
  0x4a   : > { %v239_v6 = vld [vmem:[%s1004_s1] sm:$0xff]  ;;  %235 = vst [vmem:[#allocation2] sm:$0xff] %v206_v0  ;;  %511 = vmatprep.mubr.msk.f32.mxu1 %vm267_vm0, %v241_v7  ;;  %v245_v8 = vld [vmem:[%s1005_s2 + $0x10] sm:$0xff]  ;;  %612 = vset.pattern.permute.xlu1 %v747_v10  ;;  %v244_v13 = vld [vmem:[%s1005_s2 + $0x8] sm:$0xff]  ;;  %s381_s10 = sadd.s32 %s729_s16, %s488_s29  ;;  %s384_s21 = sshll.u32 %s906_s11, 4  ;;  %s945_s21 = int_to_ptr.vmem [resolvable:$true] %s384_s21 }
  0x4b   : > { %508 = vmatprep.mubr.msk.f32.mxu0 %vm267_vm0, %v239_v6  ;;  %v223_v9 = vshrl.u32 %v222_v5, 7  ;;  %611 = vset.pattern.permute.xlu0 %v747_v10  ;;  %v243_v11 = vld [vmem:[%s1005_s2] sm:$0xff]  ;;  %v240_v17 = vld [vmem:[%s1004_s1 + $0x8] sm:$0xff]  ;;  %v242_v18 = vld [vmem:[%s1004_s1 + $0x18] sm:$0xff]  ;;  %s489_s20 = sshll.u32 %s381_s10, 7  ;;  %s370_s15 = scalar_lea.sflag [#allocation5], %s898_s7 }
  0x4c   : > { %259 = vperm.xlu1 %612, %v245_v8   ;;  %249 = vperm.xlu0 %611, %v243_v11   ;;  %s943_s26 = scalar_lea.hbm %s1006_s3, %s489_s20  ;;  %s643_s16 = scalar_lea.vmem %s945_s21, 512 }
  0x4d   : > { %vm227_vm1 = vcmp.lt.s32.totalorder %v223_v9, 4  ;;  %p644_p8 = scmp.ne.s32.totalorder %s945_s21, %s643_s16  ;;  %p1015_p12 = scmp.ne.s32.totalorder %s1012_s28, 0 }
  0x4e   : > { %v231_v14 = vsel %vm227_vm1, %v218_v4, %v206_v0  ;;  %s748_s8 = smov [#allocation6]  }
  0x4f   : > { %v514_v15 = vpack.c.bf16 %v207_v1, %v231_v14  ;;  %p645_p0 = pnand %p644_p8, %p1015_p12  ;;  %s647_s9 = sshll.u32 %s748_s8, 4  ;;  %s648_s9 = int_to_ptr.vmem [resolvable:$false] %s647_s9 }
  0x50   : > { %264 = vperm.xlu1 %612, %v246_v12   ;;  %254 = vperm.xlu0 %611, %v244_v13   ;;  %s649_s5 = scalar_lea.vmem %s648_s9, 1024  ;;  %p650_p13 = scmp.lt.s32.totalorder %s945_s21, %s648_s9 }
  0x51   : > { %515 = vmatprep.subr.bf16.mxu0 %v514_v15  ;;  %522 = vmatprep.subr.bf16.mxu1 %v514_v15  ;;  %p646_p11 = pneg %p645_p0  ;;  %p651_p1 = scmp.lt.s32.totalorder %s649_s5, %s643_s16 }
  0x52   : > { %517 = vmatpush3.bf16.msra.mxu0 %v514_v15  ;;  %524 = vmatpush3.bf16.msra.mxu1 %v514_v15 }
  0x53   : > { %519 = vmatprep.subr.bf16.mxu0 %v518_v16  ;;  %523 = vmatprep.subr.bf16.mxu1 %v518_v16  ;;  %p652_p4 = por %p651_p1, %p650_p13 }
  0x55   : > { %p653_p3 = pnand %p652_p4, %p646_p11 }
  0x56   : > { %521 = vmatpush3.bf16.msra.mxu0 %v518_v16  ;;  %525 = vmatpush3.bf16.msra.mxu1 %v518_v16 }
  0x59   : > { %509 = vmatmul.mubr.msk.f32.vlgmr.msra.gmra.mrb[0].mxu0 %vm267_vm0, %v240_v17  ;;  %512 = vmatmul.mubr.msk.f32.vlgmr.msra.gmra.mrb[0].mxu1 %vm267_vm0, %v242_v18 }
  0xcb   : > { %v260_v19 = vpop.permute.xlu1 %259  ;;  %v250_v20 = vpop.permute.xlu0 %249 }
  0xcf   : > { %v265_v21 = vpop.permute.xlu1 %264  ;;  %v255_v22 = vpop.permute.xlu0 %254 }
 0x12c   : > { %v510_v23 = vpop.f32.mrb[0].mxu0  ;;  %v513_v24 = vpop.f32.mrb[0].mxu1 }
 0x12d   : > { %v352_v25 = vadd.f32 %v510_v23, %v255_v22  ;;  %v362_v26 = vadd.f32 %v513_v24, %v265_v21  ;;  %v346_v27 = vpop.f32.mrb[1].mxu0  ;;  %v356_v28 = vpop.f32.mrb[1].mxu1 }
 0x12e   : > { %v347_v29 = vadd.f32 %v346_v27, %v250_v20  ;;  %v357_v30 = vadd.f32 %v356_v28, %v260_v19 }
 0x12f   : > { %366 = vst [vmem:[%s906_s11 + $0x8] sm:$0xff] %v352_v25  ;;  %368 = vst [vmem:[%s906_s11 + $0x18] sm:$0xff] %v362_v26 }
 0x130   : > { %365 = vst [vmem:[%s906_s11] sm:$0xff] %v347_v29  ;;  %367 = vst [vmem:[%s906_s11 + $0x10] sm:$0xff] %v357_v30 }
 0x131   : > { %656 = shalt.err (!%p653_p3)
}
 0x132   : > { %s657_s11 = scalar_lea.hbm %s943_s26, 512  ;;  %s661_s27 = scalar_lea.hbm %s1006_s3, 4096 }
 0x133   : > { %p658_p6 = scmp.ne.s32.totalorder %s943_s26, %s657_s11  ;;  %p662_p5 = scmp.lt.u32.totalorder %s943_s26, %s1006_s3 }
 0x134   : > { %p663_p10 = scmp.lt.u32.totalorder %s661_s27, %s657_s11  ;;  %p665_p8 = scmp.lt.u32.totalorder %s657_s11, %s943_s26 }
 0x135   : > { %p659_p7 = pnand %p658_p6, %p1015_p12 }
 0x136   : > { %p664_p9 = por %p663_p10, %p662_p5 }
 0x137   : > { %p660_p2 = pneg %p659_p7 }
 0x138   : > { %p666_p0 = por %p665_p8, %p664_p9 }
 0x13a   : > { %p667_p11 = pnand %p666_p0, %p660_p2 }
 0x13c   : > { %670 = shalt.err (!%p667_p11)
}
 0x13d   : > { %s749_s20 = smov 128   ;;  %s750_s30 = smov 256  }
 0x13e   : > { %s751_s23 = smov 8  }
 0x13f   : > { %528 = dma.vmem_to_hbm [thread:$0]  (%p1015_p12), %s945_s21, 512, %s943_s26, %s370_s15, %s749_s20, %s750_s30, %s751_s23  }
 0x140 PF: > { %p539_p13 = scmp.ge.s32.totalorder %s741_s19, 2  ;;  %s399_s16 = sand.u32 1, %s713_s12  }
 0x141   : > { %p1016_p1 = scmp.ne.s32.totalorder %s1013_s4, 0  ;;  %s400_s8 = scalar_lea.sflag [#allocation5], %s399_s16 }
 0x143   : > { %p535_p4 = pnand %p539_p13, %p1016_p1 }
 0x145   : > { %708 = dma.done.wait (!%p535_p4), %s400_s8, 512  }
 0x146   : > { %710 = vsyncadd (!%p535_p4), %s400_s8, 4294966784  ;;  %s19_s19 = sadd.s32 1, %s741_s19   ;;  %s1017_s28 = sld [smem:[#allocation9_spill]] }
 0x147   : > { %p16_p3 = scmp.ge.s32.totalorder %s19_s19, 10   ;;  %s1018_s12 = smov %s717_s13 }
 0x148   : > { %s1019_s13 = smov %s721_s14  ;;  %s1020_s14 = smov %s850_s6 }
 0x149   : > { %s1021_s15 = smov %s733_s17  ;;  %s1022_s16 = smov %s737_s18 }
 0x14a   : > { %s1023_s17 = smov %s1026_s22  ;;  %18 = sbr.rel (!%p16_p3) target bundleno = 7 (0x7), region = 81 }
 0x14c   : > { %s1024_s18 = smov %s1017_s28 }
 0x151   :  { %405 = vsyncpa [#allocation4], 1 }
 0x152   :  { %407 = vsyncpa [#allocation4 + $0x1], 1 }
 0x153   :  { %408 = vsyncpa [#allocation5], 1 }
 0x154   :  { %410 = vsyncpa [#allocation5 + $0x1], 1 }

</bundles_post_ra>
